<compile_context>
chip_gen: v7x
topology: tpu7x:2x2x1
jax: 0.10.0
libtpu: 0.0.40
codegen_flags: <defaults>
</compile_context>

<pallas_src>
import math
import functools

import jax
import jax.numpy as jnp
import numpy as np
from jax.experimental import pallas as pl
from jax.experimental.pallas import tpu as pltpu


def _build_pe(max_len: int, d_model: int) -> jnp.ndarray:
    """Deterministic sinusoidal table, identical to the PyTorch __init__."""
    position = jnp.arange(max_len, dtype=jnp.float32)[:, None]            # (L, 1)
    div_term = jnp.exp(
        jnp.arange(0, d_model, 2, dtype=jnp.float32) * (-math.log(10000.0) / d_model)
    )                                                                     # (D/2,)
    pe = jnp.zeros((max_len, d_model), dtype=jnp.float32)
    pe = pe.at[:, 0::2].set(jnp.sin(position * div_term))
    pe = pe.at[:, 1::2].set(jnp.cos(position * div_term))
    return pe                                                             # (L, D)


def _pe_eval_kernel(x_ref, pe_ref, o_ref):
    # Pure streaming add: x tile (ts, B*D) + pre-tiled pe tile (ts, B*D).
    o_ref[...] = (x_ref[...] + pe_ref[...]).astype(o_ref.dtype)


def _pe_train_kernel(seed_ref, x_ref, pe_ref, o_ref, *, p: float, block_rows: int):
    y = x_ref[...] + pe_ref[...]

    # Stateless dropout mask: murmur3-style hash of (global_row, col) ^ seed.
    # Keep iff hash >= round(p * 2^32)  ->  drop probability exactly ~p.
    # TODO(synk): exact bit-for-bit match of torch.nn.Dropout's RNG stream is not
    # reproducible here; only the keep-probability / 1/(1-p) scaling semantics are.
    shape = y.shape
    row_off = (pl.program_id(0) * block_rows).astype(jnp.uint32)
    rows = jax.lax.broadcasted_iota(jnp.int32, shape, 0).astype(jnp.uint32) + row_off
    cols = jax.lax.broadcasted_iota(jnp.int32, shape, 1).astype(jnp.uint32)

    h = rows * jnp.uint32(0x9E3779B1) + cols * jnp.uint32(0x85EBCA77)
    h = h ^ seed_ref[0].astype(jnp.uint32)
    # fmix32 avalanche
    h = h ^ (h >> jnp.uint32(16))
    h = h * jnp.uint32(0x85EBCA6B)
    h = h ^ (h >> jnp.uint32(13))
    h = h * jnp.uint32(0xC2B2AE35)
    h = h ^ (h >> jnp.uint32(16))

    threshold = jnp.uint32(min(int(round(p * 4294967296.0)), 0xFFFFFFFF))
    keep = h >= threshold
    y = jnp.where(keep, y * (1.0 / (1.0 - p)), jnp.zeros_like(y))
    o_ref[...] = y.astype(o_ref.dtype)


def _choose_block_rows(S: int, row_bytes: int, target_bytes: int = 2 << 20) -> int:
    """Largest multiple-of-8 divisor of S whose x block is <= target; else full S."""
    cand = max(1, int(target_bytes) // max(int(row_bytes), 1))
    if cand >= S:
        return S
    best = None
    for d in range(8, cand + 1, 8):
        if S % d == 0:
            best = d
    return best if best is not None else S


def positional_encoding(x, pe, *, p=0.1, training=False, seed=0, block_rows=None):
    """x: (S, B, D); pe: (max_len, D) float32 sinusoidal table. Returns (S, B, D)."""
    S, B, D = x.shape
    assert pe.shape[0] >= S and pe.shape[1] == D
    BD = B * D

    # Lane-dense 2-D views. x.reshape is a free row-major reshape; pe is tiled
    # once so its rows line up with the flattened (B*D) lane layout of x.
    x2 = x.reshape(S, BD)
    pe2 = jnp.tile(pe[:S].astype(jnp.float32), (1, B))                   # (S, BD)

    if block_rows is None:
        block_rows = _choose_block_rows(S, BD * x2.dtype.itemsize)
    assert S % block_rows == 0
    grid = (S // block_rows,)

    data_specs = [
        pl.BlockSpec((block_rows, BD), lambda i: (i, 0)),                # x tile
        pl.BlockSpec((block_rows, BD), lambda i: (i, 0)),                # pe tile
    ]
    out_spec = pl.BlockSpec((block_rows, BD), lambda i: (i, 0))

    compiler_params = pltpu.CompilerParams(
        dimension_semantics=("parallel",),          # grid steps are independent
        vmem_limit_bytes=32 * 1024 * 1024,          # raise v5e's 16 MiB default
    )

    use_dropout = bool(training) and float(p) > 0.0
    if use_dropout:
        kernel = functools.partial(
            _pe_train_kernel, p=float(p), block_rows=int(block_rows)
        )
        in_specs = [pl.BlockSpec(memory_space=pltpu.SMEM)] + data_specs  # seed scalar
        args = (jnp.array([seed], dtype=jnp.int32), x2, pe2)
    else:
        kernel = _pe_eval_kernel
        in_specs = data_specs
        args = (x2, pe2)

    out2 = pl.pallas_call(
        kernel,
        out_shape=jax.ShapeDtypeStruct((S, BD), x.dtype),
        grid_spec=pltpu.PrefetchScalarGridSpec(
            num_scalar_prefetch=0,
            grid=grid,
            in_specs=in_specs,
            out_specs=out_spec,
        ),
        compiler_params=compiler_params,
    )(*args)

    return out2.reshape(S, B, D)


if __name__ == "__main__":
    # Small shapes: seq=16, batch=2, d_model=32, max_len=64
    S, B, D, MAX_LEN = 16, 2, 32, 64
    P_DROP = 0.1

    key = jax.random.PRNGKey(0)
    x = jax.random.normal(key, (S, B, D), dtype=jnp.float32)
    pe = _build_pe(MAX_LEN, D)

    ref = x + pe[:S][:, None, :]

    # --- eval mode (dropout = identity): exact semantics ---
    out_eval = jax.block_until_ready(
        positional_encoding(x, pe, p=P_DROP, training=False)
    )
    np.testing.assert_allclose(np.asarray(out_eval), np.asarray(ref),
                               rtol=1e-6, atol=1e-6)

    # --- train mode: every element is either 0 (dropped) or ref/(1-p) (kept) ---
    out_train = jax.block_until_ready(
        positional_encoding(x, pe, p=P_DROP, training=True, seed=1234)
    )
    o = np.asarray(out_train)
    r = np.asarray(ref)
    ok = (o == 0.0) | np.isclose(o, r / (1.0 - P_DROP), rtol=1e-5, atol=1e-6)
    assert ok.all(), "train-mode outputs are not in {0, x/(1-p)}"
    frac_dropped = float((o == 0.0).mean())
    assert 0.01 <= frac_dropped <= 0.4, f"implausible drop fraction {frac_dropped}"

    print("KERNEL_OK")
</pallas_src>

<mosaic_0001>
module attributes {stable_mosaic.version = 11 : i64} {
  func.func @_pe_eval_kernel(%arg0: i32, %arg1: memref<16x64xf32, #tpu.memory_space<vmem>>, %arg2: memref<16x64xf32, #tpu.memory_space<vmem>>, %arg3: memref<16x64xf32, #tpu.memory_space<vmem>>) attributes {dimension_semantics = [#tpu.dimension_semantics<parallel>], iteration_bounds = array<i64: 1>, scalar_prefetch = 0 : i64, scratch_operands = 0 : i64, tpu.core_type = #tpu.core_type<tc>, window_params = [{transform_indices = @transform_0, window_bounds = array<i64: 16, 64>}, {transform_indices = @transform_1, window_bounds = array<i64: 16, 64>}, {transform_indices = @transform_2, window_bounds = array<i64: 16, 64>}]} {
    %c0 = arith.constant 0 : index
    %c0_0 = arith.constant 0 : index
    %0 = vector.load %arg1[%c0, %c0_0] : memref<16x64xf32, #tpu.memory_space<vmem>>, vector<16x64xf32>
    %c0_1 = arith.constant 0 : index
    %c0_2 = arith.constant 0 : index
    %1 = vector.load %arg2[%c0_1, %c0_2] : memref<16x64xf32, #tpu.memory_space<vmem>>, vector<16x64xf32>
    %2 = arith.addf %0, %1 : vector<16x64xf32>
    %c0_3 = arith.constant 0 : index
    %c0_4 = arith.constant 0 : index
    %3 = vector.load %arg3[%c0_3, %c0_4] : memref<16x64xf32, #tpu.memory_space<vmem>>, vector<16x64xf32>
    tpu.vector_store %arg3[%c0_3, %c0_4], %2 {strides = array<i32>} : memref<16x64xf32, #tpu.memory_space<vmem>>, vector<16x64xf32>,
    return
  }
  func.func @transform_0(%arg0: i32) -> (i32, i32) {
    %c0_i32 = arith.constant 0 : i32
    %c0_i32_0 = arith.constant 0 : i32
    return %arg0, %c0_i32 : i32, i32
  }
  func.func @transform_1(%arg0: i32) -> (i32, i32) {
    %c0_i32 = arith.constant 0 : i32
    %c0_i32_0 = arith.constant 0 : i32
    return %arg0, %c0_i32 : i32, i32
  }
  func.func @transform_2(%arg0: i32) -> (i32, i32) {
    %c0_i32 = arith.constant 0 : i32
    %c0_i32_0 = arith.constant 0 : i32
    return %arg0, %c0_i32 : i32, i32
  }
}

</mosaic_0001>

<bundles_post_ra>
// kernel: tpu_custom_call.1
= control target key start
LH: loop header
LB: loop body
LE: loop exit
PB: predicated region body
PF: predicated region fallthrough
CT: control target
= control target key end

     0   :  { %7 = vsyncpa [#allocation3], 0  ;;  %s209_s0 = inlined_call_operand.hbm [shape: f32[16,64], index: 0, kind: input, shape index: {}]   ;;  %s210_s1 = inlined_call_operand.hbm [shape: f32[16,64], index: 1, kind: input, shape index: {}]   ;;  %s211_s2 = inlined_call_operand.hbm [shape: f32[16,64], index: 2, kind: output, shape index: {}]  }
   0x1   :  { %8 = vsyncpa [#allocation6], 0 }
   0x2   :  { %9 = vsyncpa [#allocation4], 0  ;;  %s144_s9 = smov [#allocation2]   ;;  %s72_s13 = scalar_lea.hbm %s209_s0, 256 }
   0x3   :  { %s15_s10 = sshll.u32 %s144_s9, 4  ;;  %p73_p0 = scmp.ne.s32.totalorder %s209_s0, %s72_s13  ;;  %s16_s10 = int_to_ptr.vmem [resolvable:$true] %s15_s10 }
   0x4   :  { %p76_p1 = scmp.lt.u32.totalorder %s72_s13, %s209_s0 }
   0x6   :  { %p78_p2 = pnand %p76_p1, %p73_p0 }
   0x8   :  { %81 = shalt.err (!%p78_p2)
}
   0x9   :  { %s82_s18 = scalar_lea.vmem %s16_s10, 256  ;;  %p87_p4 = scmp.lt.s32.totalorder %s16_s10, %s16_s10 }
   0xa   :  { %p83_p3 = scmp.ne.s32.totalorder %s16_s10, %s82_s18  ;;  %p88_p5 = scmp.lt.s32.totalorder %s82_s18, %s82_s18 }
   0xc   :  { %p89_p6 = por %p88_p5, %p87_p4 }
   0xe   :  { %p90_p7 = pnand %p89_p6, %p83_p3 }
  0x10   :  { %93 = shalt.err (!%p90_p7)
}
  0x11   :  { %s145_s19 = smov 128   ;;  %s146_s20 = smov 8  }
  0x12   :  { %21 = dma.hbm_to_vmem [thread:$0]  %s209_s0, 256, %s16_s10, [#allocation3], %s145_s19, %s145_s19, %s146_s20  }
  0x13   :  { %s147_s23 = smov [#allocation5]   ;;  %s94_s27 = scalar_lea.hbm %s210_s1, 256 }
  0x14   :  { %s27_s24 = sshll.u32 %s147_s23, 4  ;;  %p95_p8 = scmp.ne.s32.totalorder %s210_s1, %s94_s27  ;;  %s28_s24 = int_to_ptr.vmem [resolvable:$true] %s27_s24 }
  0x15   :  { %p98_p9 = scmp.lt.u32.totalorder %s94_s27, %s210_s1 }
  0x17   :  { %p100_p10 = pnand %p98_p9, %p95_p8 }
  0x19   :  { %103 = shalt.err (!%p100_p10)
}
  0x1a   :  { %s104_s4 = scalar_lea.vmem %s28_s24, 256  ;;  %p109_p12 = scmp.lt.s32.totalorder %s28_s24, %s28_s24 }
  0x1b   :  { %p105_p11 = scmp.ne.s32.totalorder %s28_s24, %s104_s4  ;;  %p110_p13 = scmp.lt.s32.totalorder %s104_s4, %s104_s4 }
  0x1d   :  { %p111_p0 = por %p110_p13, %p109_p12 }
  0x1f   :  { %p112_p1 = pnand %p111_p0, %p105_p11 }
  0x21   :  { %115 = shalt.err (!%p112_p1)
}
  0x22   :  { %33 = dma.hbm_to_vmem [thread:$0]  %s210_s1, 256, %s28_s24, [#allocation6], %s145_s19, %s145_s19, %s146_s20  }
  0x23   :  { %138 = dma.done.wait [#allocation3], 256  }
  0x24   :  { %139 = vsyncadd [#allocation3], 4294967040 }
  0x25   :  { %140 = dma.done.wait [#allocation6], 256  }
  0x26   :  { %141 = vsyncadd [#allocation6], 4294967040  ;;  %s148_s6 = smov [#allocation7]   ;;  %v40_v0 = vld [vmem:[#allocation2] sm:$0xff]  ;;  %v42_v1 = vld [vmem:[#allocation5] sm:$0xff]  ;;  %vm46_vm0 = vcmask 523264  }
  0x27   :  { %s54_s7 = sshll.u32 %s148_s6, 4  ;;  %v41_v2 = vld [vmem:[#allocation2 + $0x8] sm:$0xff]  ;;  %v44_v3 = vadd.f32 %v42_v1, %v40_v0  ;;  %v43_v4 = vld [vmem:[#allocation5 + $0x8] sm:$0xff]  ;;  %s55_s7 = int_to_ptr.vmem [resolvable:$true] %s54_s7 }
  0x28   :  { %v45_v5 = vadd.f32 %v43_v4, %v41_v2  ;;  %s116_s8 = scalar_lea.vmem %s55_s7, 256  ;;  %p121_p3 = scmp.lt.s32.totalorder %s55_s7, %s55_s7 }
  0x29   :  { %47 = vst.msk [vmem:[#allocation7] sm:$0xff] %vm46_vm0, %v44_v3  ;;  %p117_p2 = scmp.ne.s32.totalorder %s55_s7, %s116_s8  ;;  %p122_p4 = scmp.lt.s32.totalorder %s116_s8, %s116_s8 }
  0x2a   :  { %48 = vst.msk [vmem:[#allocation7 + $0x8] sm:$0xff] %vm46_vm0, %v45_v5 }
  0x2b   :  { %p123_p5 = por %p122_p4, %p121_p3 }
  0x2d   :  { %p124_p6 = pnand %p123_p5, %p117_p2 }
  0x2f   :  { %127 = shalt.err (!%p124_p6)
}
  0x30   :  { %s128_s10 = scalar_lea.hbm %s211_s2, 256 }
  0x31   :  { %p129_p7 = scmp.ne.s32.totalorder %s211_s2, %s128_s10  ;;  %p132_p8 = scmp.lt.u32.totalorder %s128_s10, %s211_s2 }
  0x33   :  { %p134_p9 = pnand %p132_p8, %p129_p7 }
  0x35   :  { %137 = shalt.err (!%p134_p9)
}
  0x36   :  { %60 = dma.vmem_to_hbm [thread:$0]  %s55_s7, 256, %s211_s2, [#allocation4], %s145_s19, %s145_s19, %s146_s20  }
  0x37   :  { %142 = dma.done.wait [#allocation4], 256  }
  0x38   :  { %143 = vsyncadd [#allocation4], 4294967040 }
  0x39   :  { %64 = vsyncpa [#allocation3], 1 }
  0x3a   :  { %65 = vsyncpa [#allocation6], 1 }
  0x3b   :  { %66 = vsyncpa [#allocation4], 1 }

</bundles_post_ra>
